<compile_context>
chip_gen: v7x
topology: tpu7x:2x2x1
jax: 0.10.0
libtpu: 0.0.40
codegen_flags: <defaults>
</compile_context>

<pallas_src>
import jax
import jax.numpy as jnp
from jax.experimental import pallas as pl
from jax.experimental.pallas import tpu as pltpu


# ----------------------------- Pallas kernel ---------------------------------
def value_kernel(wv_ref, b3_ref, bv_ref,                       # SMEM scalars
                 h_ref, w1_ref, b1_ref, w2_ref, b2_ref, w3_ref,  # VMEM tiles
                 out_ref):
    """grid = (num_token_tiles, n_layer); the layer axis (last) is the reduction axis.

    The output block index depends only on the token-tile axis, so out_ref is resident
    across the layer loop and is used directly as the f32 accumulator."""
    l = pl.program_id(1)

    @pl.when(l == 0)
    def _init():
        out_ref[...] = jnp.zeros_like(out_ref)

    # value_head1[l]: Linear(D,3D) -> ReLU -> Linear(3D,H2) -> ReLU -> Linear(H2,1)
    a1 = jnp.dot(h_ref[...], w1_ref[...],
                 preferred_element_type=jnp.float32) + b1_ref[...]      # (TN, H1) f32
    a1 = jnp.maximum(a1, 0.0).astype(jnp.bfloat16)
    a2 = jnp.dot(a1, w2_ref[...],
                 preferred_element_type=jnp.float32) + b2_ref[...]      # (TN, H2p) f32
    a2 = jnp.maximum(a2, 0.0)

    # Third Linear has output width 1: run it as a VPU multiply + lane reduction
    # (frees the MXU) and fold the value_head2 per-layer weight into the same expression.
    v = jnp.sum(a2 * w3_ref[...], axis=-1, keepdims=True) + b3_ref[l]   # (TN, 1)
    out_ref[...] += wv_ref[l] * v

    @pl.when(l == pl.num_programs(1) - 1)
    def _finalize():
        out_ref[...] += bv_ref[0]


def value_head_pallas(h_stack, kparams, tn=512):
    """h_stack: (L, N, D) bfloat16; returns (N,) float32."""
    w1, b1, w2, b2, w3, b3, wv, bv = kparams
    L, N, D = h_stack.shape
    H1 = w1.shape[-1]
    H2p = w2.shape[-1]                       # already padded to a multiple of 128

    # Token-dimension tile: multiple of 8 sublanes, capped so VMEM stays bounded on all gens.
    TN = max(8, min(tn, ((N + 7) // 8) * 8))
    Np = ((N + TN - 1) // TN) * TN
    if Np != N:
        h_stack = jnp.pad(h_stack, ((0, 0), (0, Np - N), (0, 0)))

    grid = (Np // TN, L)

    out = pl.pallas_call(
        value_kernel,
        out_shape=jax.ShapeDtypeStruct((Np, 1), jnp.float32),
        grid=grid,
        in_specs=[
            pl.BlockSpec(memory_space=pltpu.MemorySpace.SMEM),            # wv (L,)
            pl.BlockSpec(memory_space=pltpu.MemorySpace.SMEM),            # b3 (L,)
            pl.BlockSpec(memory_space=pltpu.MemorySpace.SMEM),            # bv (1,)
            pl.BlockSpec((None, TN, D),   lambda n, l: (l, n, 0)),        # hidden states tile
            pl.BlockSpec((None, D, H1),   lambda n, l: (l, 0, 0)),        # W1[l]  (bf16)
            pl.BlockSpec((None, 1, H1),   lambda n, l: (l, 0, 0)),        # b1[l]
            pl.BlockSpec((None, H1, H2p), lambda n, l: (l, 0, 0)),        # W2[l]  (bf16)
            pl.BlockSpec((None, 1, H2p),  lambda n, l: (l, 0, 0)),        # b2[l]
            pl.BlockSpec((None, 1, H2p),  lambda n, l: (l, 0, 0)),        # W3[l] row
        ],
        out_specs=pl.BlockSpec((TN, 1), lambda n, l: (n, 0)),
        compiler_params=pltpu.CompilerParams(
            dimension_semantics=("parallel", "arbitrary"),
            vmem_limit_bytes=48 * 1024 * 1024,
        ),
    )(wv, b3, bv, h_stack, w1, b1, w2, b2, w3)
    return out[:N, 0]


# ------------------------- parameter construction ----------------------------
def init_value_params(key, n_layer, n_embd):
    """Parameters of value_head1 / value_head2, stored transposed to (in, out) so the
    kernel computes x @ W + b (equivalent to PyTorch nn.Linear with weight = W.T)."""
    D, H1, H2 = n_embd, 3 * n_embd, max(1, n_embd // 4)
    ks = jax.random.split(key, 8)
    s = 0.02
    w1 = s * jax.random.normal(ks[0], (n_layer, D, H1), jnp.float32)
    b1 = s * jax.random.normal(ks[1], (n_layer, H1), jnp.float32)
    w2 = s * jax.random.normal(ks[2], (n_layer, H1, H2), jnp.float32)
    b2 = s * jax.random.normal(ks[3], (n_layer, H2), jnp.float32)
    w3 = s * jax.random.normal(ks[4], (n_layer, H2), jnp.float32)   # Linear(H2, 1) weight row
    b3 = s * jax.random.normal(ks[5], (n_layer,), jnp.float32)
    wv = s * jax.random.normal(ks[6], (n_layer,), jnp.float32)      # value_head2 weight
    bv = s * jax.random.normal(ks[7], (1,), jnp.float32)            # value_head2 bias
    return (w1, b1, w2, b2, w3, b3, wv, bv)


def prepare_kernel_params(params):
    """Pad H2 up to a multiple of 128 (lane alignment; zero-pad => numerically exact) and
    cast the two MXU weight matrices to bf16 (accumulation stays f32 inside the kernel)."""
    w1, b1, w2, b2, w3, b3, wv, bv = params
    H2 = w2.shape[-1]
    H2p = ((H2 + 127) // 128) * 128
    pad = H2p - H2
    w2p = jnp.pad(w2, ((0, 0), (0, 0), (0, pad)))
    b2p = jnp.pad(b2, ((0, 0), (0, pad)))
    w3p = jnp.pad(w3, ((0, 0), (0, pad)))
    return (w1.astype(jnp.bfloat16),
            b1[:, None, :],                    # (L, 1, H1)  f32
            w2p.astype(jnp.bfloat16),
            b2p[:, None, :],                   # (L, 1, H2p) f32
            w3p[:, None, :],                   # (L, 1, H2p) f32
            b3, wv, bv)


# ----------------- synthetic GPT-2 stand-in (plain JAX glue) ------------------
def fake_gpt2(key, input_ids, n_layer, n_embd, vocab):
    """Deterministic stand-in for the external gpt2_model: returns
    (lm_logits, presents, hidden_states_list_of_len_Lplus1)."""
    B, T = input_ids.shape
    ks = jax.random.split(key, n_layer + 2)
    emb = 0.02 * jax.random.normal(ks[0], (vocab, n_embd), jnp.float32)
    h = emb[input_ids]                                   # (B, T, D)
    hidden_states = [h]
    for i in range(n_layer):
        w = 0.02 * jax.random.normal(ks[1 + i], (n_embd, n_embd), jnp.float32)
        h = jnp.tanh(h @ w) + h
        hidden_states.append(h)
    w_lm = 0.02 * jax.random.normal(ks[-1], (n_embd, vocab), jnp.float32)
    lm_logits = h @ w_lm                                 # (B, T, vocab)
    presents = None
    return lm_logits, presents, hidden_states


# ----------------------------- model forward ---------------------------------
def policy_value_forward(gpt2_key, value_params, input_ids, n_layer, n_embd, vocab,
                         return_value=False):
    lm_logits, presents, hidden_states = fake_gpt2(gpt2_key, input_ids, n_layer, n_embd, vocab)
    if not return_value:
        return lm_logits, presents, hidden_states
    B, T, D = hidden_states[1].shape
    # torch.stack(hidden_states[1:], -1) -> (B, T, D, L); kernel layout is (L, B*T, D) bf16.
    # TODO(synk): a real backbone should emit hidden states directly in this layout/dtype to
    #             avoid the extra HBM copy done by this stack+reshape.
    h_stack = (jnp.stack(hidden_states[1:], axis=0)
               .reshape(n_layer, B * T, D)
               .astype(jnp.bfloat16))
    kparams = prepare_kernel_params(value_params)
    value = value_head_pallas(h_stack, kparams).reshape(B, T)   # squeeze(-1)
    return lm_logits, presents, hidden_states, value


# --------------------------- pure-JAX reference -------------------------------
def value_reference(hidden_states, params, n_layer):
    """Mirrors the kernel's mixed precision (bf16 MXU inputs, f32 accumulation) so the
    comparison can be tight."""
    w1, b1, w2, b2, w3, b3, wv, bv = params
    hp = jax.lax.Precision.HIGHEST
    f32, bf16 = jnp.float32, jnp.bfloat16
    vals = []
    for i in range(n_layer):
        h = hidden_states[1 + i].astype(bf16).astype(f32)
        a1 = jnp.dot(h, w1[i].astype(bf16).astype(f32), precision=hp) + b1[i]
        a1 = jnp.maximum(a1, 0.0).astype(bf16).astype(f32)
        a2 = jnp.dot(a1, w2[i].astype(bf16).astype(f32), precision=hp) + b2[i]
        a2 = jnp.maximum(a2, 0.0)
        vals.append(jnp.sum(a2 * w3[i], axis=-1) + b3[i])    # (B, T)
    cat = jnp.stack(vals, axis=-1)                           # (B, T, L)
    return jnp.dot(cat, wv, precision=hp) + bv[0]            # (B, T)


if __name__ == "__main__":
    n_layer, n_embd, vocab = 4, 32, 50
    B, T = 2, 8

    key = jax.random.PRNGKey(0)
    k_params, k_gpt2, k_ids = jax.random.split(key, 3)

    value_params = init_value_params(k_params, n_layer, n_embd)
    input_ids = jax.random.randint(k_ids, (B, T), 0, vocab)

    lm_logits, presents, hidden_states, value = policy_value_forward(
        k_gpt2, value_params, input_ids, n_layer, n_embd, vocab, return_value=True)
    value = jax.block_until_ready(value)

    ref = value_reference(hidden_states, value_params, n_layer)
    assert value.shape == (B, T)
    assert jnp.allclose(value, ref, atol=1e-5, rtol=1e-4), (value, ref)

    print("KERNEL_OK")
</pallas_src>

<mosaic_0001>
module attributes {stable_mosaic.version = 11 : i64} {
  func.func @value_kernel(%arg0: i32, %arg1: i32, %arg2: memref<4xf32, #tpu.memory_space<smem>>, %arg3: memref<4xf32, #tpu.memory_space<smem>>, %arg4: memref<1xf32, #tpu.memory_space<smem>>, %arg5: memref<1x16x32xbf16, #tpu.memory_space<vmem>>, %arg6: memref<1x32x96xbf16, #tpu.memory_space<vmem>>, %arg7: memref<1x1x96xf32, #tpu.memory_space<vmem>>, %arg8: memref<1x96x128xbf16, #tpu.memory_space<vmem>>, %arg9: memref<1x1x128xf32, #tpu.memory_space<vmem>>, %arg10: memref<1x1x128xf32, #tpu.memory_space<vmem>>, %arg11: memref<16x1xf32, #tpu.memory_space<vmem>>) attributes {dimension_semantics = [#tpu.dimension_semantics<parallel>, #tpu.dimension_semantics<arbitrary>], iteration_bounds = array<i64: 1, 4>, scalar_prefetch = 0 : i64, scratch_operands = 0 : i64, tpu.core_type = #tpu.core_type<tc>, window_params = [{transform_indices = @transform_0, window_bounds = array<i64: 4>}, {transform_indices = @transform_1, window_bounds = array<i64: 4>}, {transform_indices = @transform_2, window_bounds = array<i64: 1>}, {transform_indices = @transform_3, window_bounds = array<i64: 1, 16, 32>}, {transform_indices = @transform_4, window_bounds = array<i64: 1, 32, 96>}, {transform_indices = @transform_5, window_bounds = array<i64: 1, 1, 96>}, {transform_indices = @transform_6, window_bounds = array<i64: 1, 96, 128>}, {transform_indices = @transform_7, window_bounds = array<i64: 1, 1, 128>}, {transform_indices = @transform_8, window_bounds = array<i64: 1, 1, 128>}, {transform_indices = @transform_9, window_bounds = array<i64: 16, 1>}]} {
    %c0_i32 = arith.constant 0 : i32
    %0 = arith.cmpi eq, %arg1, %c0_i32 : i32
    %1 = arith.extui %0 : i1 to i32
    %c0_i32_0 = arith.constant 0 : i32
    %2 = arith.cmpi ne, %1, %c0_i32_0 : i32
    scf.if %2 {
      %cst_27 = arith.constant 0.000000e+00 : f32
      %44 = vector.broadcast %cst_27 : f32 to vector<16x1xf32>
      %c0_28 = arith.constant 0 : index
      %c0_29 = arith.constant 0 : index
      %45 = vector.load %arg11[%c0_28, %c0_29] : memref<16x1xf32, #tpu.memory_space<vmem>>, vector<16x1xf32>
      tpu.vector_store %arg11[%c0_28, %c0_29], %44 {strides = array<i32>} : memref<16x1xf32, #tpu.memory_space<vmem>>, vector<16x1xf32>,
    } else {
    }
    %c0 = arith.constant 0 : index
    %c0_1 = arith.constant 0 : index
    %c0_2 = arith.constant 0 : index
    %3 = vector.load %arg5[%c0, %c0_1, %c0_2] : memref<1x16x32xbf16, #tpu.memory_space<vmem>>, vector<1x16x32xbf16>
    %4 = vector.shape_cast %3 : vector<1x16x32xbf16> to vector<16x32xbf16>
    %c0_3 = arith.constant 0 : index
    %c0_4 = arith.constant 0 : index
    %c0_5 = arith.constant 0 : index
    %5 = vector.load %arg6[%c0_3, %c0_4, %c0_5] : memref<1x32x96xbf16, #tpu.memory_space<vmem>>, vector<1x32x96xbf16>
    %6 = vector.shape_cast %5 : vector<1x32x96xbf16> to vector<32x96xbf16>
    %cst = arith.constant dense<0.000000e+00> : vector<16x96xf32>
    %7 = tpu.matmul %4, %6, %cst {dimension_numbers = #tpu.dot_dimension_numbers<[1], [0], [0], [1], [0, 0, 1, 1], [], []>} : vector<16x32xbf16>, vector<32x96xbf16>, vector<16x96xf32> -> vector<16x96xf32>
    %c0_6 = arith.constant 0 : index
    %c0_7 = arith.constant 0 : index
    %c0_8 = arith.constant 0 : index
    %8 = vector.load %arg7[%c0_6, %c0_7, %c0_8] : memref<1x1x96xf32, #tpu.memory_space<vmem>>, vector<1x1x96xf32>
    %9 = vector.shape_cast %8 : vector<1x1x96xf32> to vector<1x96xf32>
    %10 = vector.broadcast %9 : vector<1x96xf32> to vector<16x96xf32>
    %11 = arith.addf %7, %10 : vector<16x96xf32>
    %cst_9 = arith.constant 0.000000e+00 : f32
    %12 = vector.broadcast %cst_9 : f32 to vector<16x96xf32>
    %13 = arith.maximumf %11, %12 : vector<16x96xf32>
    %14 = arith.truncf %13 : vector<16x96xf32> to vector<16x96xbf16>
    %c0_10 = arith.constant 0 : index
    %c0_11 = arith.constant 0 : index
    %c0_12 = arith.constant 0 : index
    %15 = vector.load %arg8[%c0_10, %c0_11, %c0_12] : memref<1x96x128xbf16, #tpu.memory_space<vmem>>, vector<1x96x128xbf16>
    %16 = vector.shape_cast %15 : vector<1x96x128xbf16> to vector<96x128xbf16>
    %cst_13 = arith.constant dense<0.000000e+00> : vector<16x128xf32>
    %17 = tpu.matmul %14, %16, %cst_13 {dimension_numbers = #tpu.dot_dimension_numbers<[1], [0], [0], [1], [0, 0, 1, 1], [], []>} : vector<16x96xbf16>, vector<96x128xbf16>, vector<16x128xf32> -> vector<16x128xf32>
    %c0_14 = arith.constant 0 : index
    %c0_15 = arith.constant 0 : index
    %c0_16 = arith.constant 0 : index
    %18 = vector.load %arg9[%c0_14, %c0_15, %c0_16] : memref<1x1x128xf32, #tpu.memory_space<vmem>>, vector<1x1x128xf32>
    %19 = vector.shape_cast %18 : vector<1x1x128xf32> to vector<1x128xf32>
    %20 = vector.broadcast %19 : vector<1x128xf32> to vector<16x128xf32>
    %21 = arith.addf %17, %20 : vector<16x128xf32>
    %cst_17 = arith.constant 0.000000e+00 : f32
    %22 = vector.broadcast %cst_17 : f32 to vector<16x128xf32>
    %23 = arith.maximumf %21, %22 : vector<16x128xf32>
    %c0_18 = arith.constant 0 : index
    %c0_19 = arith.constant 0 : index
    %c0_20 = arith.constant 0 : index
    %24 = vector.load %arg10[%c0_18, %c0_19, %c0_20] : memref<1x1x128xf32, #tpu.memory_space<vmem>>, vector<1x1x128xf32>
    %25 = vector.shape_cast %24 : vector<1x1x128xf32> to vector<1x128xf32>
    %26 = vector.broadcast %25 : vector<1x128xf32> to vector<16x128xf32>
    %27 = arith.mulf %23, %26 : vector<16x128xf32>
    %cst_21 = arith.constant dense<0.000000e+00> : vector<16xf32>
    %28 = vector.multi_reduction <add>, %27, %cst_21 [1] : vector<16x128xf32> to vector<16xf32>
    %29 = vector.shape_cast %28 : vector<16xf32> to vector<16x1xf32>
    %30 = arith.index_cast %arg1 : i32 to index
    %31 = memref.load %arg3[%30] : memref<4xf32, #tpu.memory_space<smem>>
    %32 = vector.broadcast %31 : f32 to vector<16x1xf32>
    %33 = arith.addf %29, %32 : vector<16x1xf32>
    %c0_22 = arith.constant 0 : index
    %c0_23 = arith.constant 0 : index
    %34 = vector.load %arg11[%c0_22, %c0_23] : memref<16x1xf32, #tpu.memory_space<vmem>>, vector<16x1xf32>
    %35 = arith.index_cast %arg1 : i32 to index
    %36 = memref.load %arg2[%35] : memref<4xf32, #tpu.memory_space<smem>>
    %37 = vector.broadcast %36 : f32 to vector<16x1xf32>
    %38 = arith.mulf %37, %33 : vector<16x1xf32>
    %39 = arith.addf %34, %38 : vector<16x1xf32>
    %c0_24 = arith.constant 0 : index
    %c0_25 = arith.constant 0 : index
    %40 = vector.load %arg11[%c0_24, %c0_25] : memref<16x1xf32, #tpu.memory_space<vmem>>, vector<16x1xf32>
    tpu.vector_store %arg11[%c0_24, %c0_25], %39 {strides = array<i32>} : memref<16x1xf32, #tpu.memory_space<vmem>>, vector<16x1xf32>,
    %c3_i32 = arith.constant 3 : i32
    %41 = arith.cmpi eq, %arg1, %c3_i32 : i32
    %42 = arith.extui %41 : i1 to i32
    %c0_i32_26 = arith.constant 0 : i32
    %43 = arith.cmpi ne, %42, %c0_i32_26 : i32
    scf.if %43 {
      %c0_27 = arith.constant 0 : index
      %c0_28 = arith.constant 0 : index
      %44 = vector.load %arg11[%c0_27, %c0_28] : memref<16x1xf32, #tpu.memory_space<vmem>>, vector<16x1xf32>
      %c0_29 = arith.constant 0 : index
      %45 = memref.load %arg4[%c0_29] : memref<1xf32, #tpu.memory_space<smem>>
      %46 = vector.broadcast %45 : f32 to vector<16x1xf32>
      %47 = arith.addf %44, %46 : vector<16x1xf32>
      %c0_30 = arith.constant 0 : index
      %c0_31 = arith.constant 0 : index
      %48 = vector.load %arg11[%c0_30, %c0_31] : memref<16x1xf32, #tpu.memory_space<vmem>>, vector<16x1xf32>
      tpu.vector_store %arg11[%c0_30, %c0_31], %47 {strides = array<i32>} : memref<16x1xf32, #tpu.memory_space<vmem>>, vector<16x1xf32>,
    } else {
    }
    return
  }
  func.func @transform_0(%arg0: i32, %arg1: i32) -> i32 {
    %c0_i32 = arith.constant 0 : i32
    %c0_i32_0 = arith.constant 0 : i32
    return %c0_i32 : i32
  }
  func.func @transform_1(%arg0: i32, %arg1: i32) -> i32 {
    %c0_i32 = arith.constant 0 : i32
    %c0_i32_0 = arith.constant 0 : i32
    return %c0_i32 : i32
  }
  func.func @transform_2(%arg0: i32, %arg1: i32) -> i32 {
    %c0_i32 = arith.constant 0 : i32
    %c0_i32_0 = arith.constant 0 : i32
    return %c0_i32 : i32
  }
  func.func @transform_3(%arg0: i32, %arg1: i32) -> (i32, i32, i32) {
    %c0_i32 = arith.constant 0 : i32
    %c0_i32_0 = arith.constant 0 : i32
    return %arg1, %arg0, %c0_i32 : i32, i32, i32
  }
  func.func @transform_4(%arg0: i32, %arg1: i32) -> (i32, i32, i32) {
    %c0_i32 = arith.constant 0 : i32
    %c0_i32_0 = arith.constant 0 : i32
    %c0_i32_1 = arith.constant 0 : i32
    return %arg1, %c0_i32, %c0_i32_0 : i32, i32, i32
  }
  func.func @transform_5(%arg0: i32, %arg1: i32) -> (i32, i32, i32) {
    %c0_i32 = arith.constant 0 : i32
    %c0_i32_0 = arith.constant 0 : i32
    %c0_i32_1 = arith.constant 0 : i32
    return %arg1, %c0_i32, %c0_i32_0 : i32, i32, i32
  }
  func.func @transform_6(%arg0: i32, %arg1: i32) -> (i32, i32, i32) {
    %c0_i32 = arith.constant 0 : i32
    %c0_i32_0 = arith.constant 0 : i32
    %c0_i32_1 = arith.constant 0 : i32
    return %arg1, %c0_i32, %c0_i32_0 : i32, i32, i32
  }
  func.func @transform_7(%arg0: i32, %arg1: i32) -> (i32, i32, i32) {
    %c0_i32 = arith.constant 0 : i32
    %c0_i32_0 = arith.constant 0 : i32
    %c0_i32_1 = arith.constant 0 : i32
    return %arg1, %c0_i32, %c0_i32_0 : i32, i32, i32
  }
  func.func @transform_8(%arg0: i32, %arg1: i32) -> (i32, i32, i32) {
    %c0_i32 = arith.constant 0 : i32
    %c0_i32_0 = arith.constant 0 : i32
    %c0_i32_1 = arith.constant 0 : i32
    return %arg1, %c0_i32, %c0_i32_0 : i32, i32, i32
  }
  func.func @transform_9(%arg0: i32, %arg1: i32) -> (i32, i32) {
    %c0_i32 = arith.constant 0 : i32
    %c0_i32_0 = arith.constant 0 : i32
    return %arg0, %c0_i32 : i32, i32
  }
}

</mosaic_0001>

<bundles_post_ra>
// kernel: tpu_custom_call.1
= control target key start
LH: loop header
LB: loop body
LE: loop exit
PB: predicated region body
PF: predicated region fallthrough
CT: control target
= control target key end

     0   :  { %s1662_s0 = inlined_call_operand.vmem [shape: f32[4], index: 0, kind: input, shape index: {}]   ;;  %s1663_s1 = inlined_call_operand.vmem [shape: f32[4], index: 1, kind: input, shape index: {}]   ;;  %s1664_s2 = inlined_call_operand.<no memory space> [shape: f32[1], index: 2, kind: input, shape index: {}]   ;;  %s1665_s3 = inlined_call_operand.hbm [shape: bf16[4,16,32], index: 3, kind: input, shape index: {}]   ;;  %s1666_s4 = inlined_call_operand.hbm [shape: bf16[4,32,96], index: 4, kind: input, shape index: {}]   ;;  %s1667_s5 = inlined_call_operand.vmem [shape: f32[4,1,96], index: 5, kind: input, shape index: {}]   ;;  %s1668_s6 = inlined_call_operand.hbm [shape: bf16[4,96,128], index: 6, kind: input, shape index: {}]   ;;  %s1669_s7 = inlined_call_operand.vmem [shape: f32[4,1,128], index: 7, kind: input, shape index: {}]   ;;  %s1670_s8 = inlined_call_operand.vmem [shape: f32[4,1,128], index: 8, kind: input, shape index: {}]   ;;  %s1671_s9 = inlined_call_operand.vmem [shape: f32[16,1], index: 9, kind: output, shape index: {}]  }
   0x1   :  { %1686 = sst [smem:[#allocation17_spill]] %s1662_s0 }
   0x2   :  { %1687 = sst [smem:[#allocation18_spill]] %s1663_s1 }
   0x3   :  { %1688 = sst [smem:[#allocation19_spill]] %s1665_s3 }
   0x4   :  { %1689 = sst [smem:[#allocation20_spill]] %s1666_s4 }
   0x5   :  { %14 = sst [smem:[#allocation2]] %s1664_s2 }
   0x6   :  { %15 = vsyncpa [#allocation5], 0 }
   0x7   :  { %16 = vsyncpa [#allocation7], 0 }
   0x8   :  { %17 = vsyncpa [#allocation4], 0 }
   0x9   :  { %19 = vsyncpa [#allocation4 + $0x1], 0 }
   0xa   :  { %20 = vsyncpa [#allocation10], 0 }
   0xb   :  { %22 = vsyncpa [#allocation10 + $0x1], 0  ;;  %s1337_s11 = smov 0   ;;  %s1339_s12 = smov 0  }
   0xc   :  { %s1341_s13 = smov 0   ;;  %s1343_s14 = smov 0  }
   0xd   :  { %s1345_s15 = smov 0   ;;  %s1347_s16 = smov 0  }
   0xe LB: > { %s37_s2 = sadd.s32 1, %s1268_s15  ;;  %s112_s17 = sadd.s32 1, %s1260_s13  ;;  %s1272_s16 = sphi %s1347_s16, %s28_s16   ;;  %s1268_s15 = sphi %s1345_s15, %s1714_s15   ;;  %s1264_s14 = sphi %s1343_s14, %s1713_s14   ;;  %s1260_s13 = sphi %s1341_s13, %s1712_s13   ;;  %s1256_s12 = sphi %s1339_s12, %s1711_s12   ;;  %s1252_s11 = sphi %s1337_s11, %s1710_s11  }
   0xf   : > { %p38_p0 = scmp.ge.s32.totalorder %s37_s2, 4  ;;  %p119_p1 = scmp.ne.s32.totalorder %s1260_s13, %s1256_s12 }
  0x10   : > { %p120_p2 = scmp.eq.s32.totalorder %s1272_s16, 0  ;;  %p1023_p4 = scmp.lt.s32.totalorder %s1272_s16, 4 }
  0x11   : > { %s1716_s2 = smov (%p38_p0, %s37_s2), 0  ;;  %s1378_s19 = sand.u32 1, %s1260_s13  }
  0x12   : > { %1690 = sst [smem:[#allocation16_spill]] %s1716_s2  ;;  %p121_p3 = por %p120_p2, %p119_p1 }
  0x13   : > { %s107_s18 = ssub.s32 %s1268_s15, %s1716_s2  ;;  %s353_s22 = sand.u32 1, %s1272_s16  }
  0x14   : > { %p110_p5 = scmp.eq.s32.totalorder %s107_s18, 0  ;;  %p1380_p6 = pnand %p1023_p4, %p121_p3 }
  0x15   : > { %s922_s23 = sshll.u32 %s1378_s19, 4  ;;  %s952_s24 = sshll.u32 %s1268_s15, 8 }
  0x16   : > { %s1691_s20 = scalar_select %p1380_p6, 1, 0 }
  0x17   : > { %s1385_s21 = scalar_select %p110_p5, %s1260_s13, %s112_s17  }
  0x18   : > { %s1692_s4 = sld [smem:[#allocation20_spill]]  ;;  %s357_s28 = scalar_lea.vmem [#allocation9], %s922_s23 }
  0x19   : > { %s364_s29 = sshll.u32 %s357_s28, 4  ;;  %s1397_s30 = scalar_lea.sflag [#allocation10], %s353_s22  ;;  %s1395_s29 = int_to_ptr.vmem [resolvable:$true] %s364_s29 }
  0x1a   : > { %p1403_p8 = pneg %p1380_p6 }
  0x1c   : > { %s1693_s17 = scalar_select %p1403_p8, 1, 0 }
  0x1e   : > { %s1393_s27 = scalar_lea.hbm %s1692_s4, %s952_s24  ;;  %s1095_s23 = scalar_lea.hbm %s1692_s4, 1024 }
  0x1f   : > { %s1090_s10 = scalar_lea.hbm %s1393_s27, 256  ;;  %p1096_p11 = scmp.lt.u32.totalorder %s1393_s27, %s1692_s4 }
  0x20   : > { %p1091_p7 = scmp.ne.s32.totalorder %s1393_s27, %s1090_s10  ;;  %p1097_p12 = scmp.lt.u32.totalorder %s1095_s23, %s1090_s10 }
  0x21   : > { %p1099_p0 = scmp.lt.u32.totalorder %s1090_s10, %s1393_s27 }
  0x22   : > { %p1093_p9 = pnand %p1403_p8, %p1091_p7  ;;  %p1098_p13 = por %p1097_p12, %p1096_p11 }
  0x24   : > { %p1094_p10 = pneg %p1093_p9  ;;  %p1100_p1 = por %p1099_p0, %p1098_p13 }
  0x26   : > { %p1101_p2 = pnand %p1100_p1, %p1094_p10 }
  0x28   : > { %1104 = shalt.err (!%p1101_p2)
}
  0x29   : > { %s1105_s22 = scalar_lea.vmem %s1395_s29, 256  ;;  %s1274_s28 = smov [#allocation9]  }
  0x2a   : > { %p1106_p3 = scmp.ne.s32.totalorder %s1395_s29, %s1105_s22  ;;  %s1110_s18 = sshll.u32 %s1274_s28, 4  ;;  %s1111_s18 = int_to_ptr.vmem [resolvable:$false] %s1110_s18 }
  0x2b   : > { %s1112_s24 = scalar_lea.vmem %s1111_s18, 512  ;;  %p1113_p7 = scmp.lt.s32.totalorder %s1395_s29, %s1111_s18 }
  0x2c   : > { %p1108_p4 = pnand %p1106_p3, %p1403_p8  ;;  %p1114_p9 = scmp.lt.s32.totalorder %s1112_s24, %s1105_s22 }
  0x2e   : > { %p1109_p5 = pneg %p1108_p4  ;;  %p1115_p11 = por %p1114_p9, %p1113_p7 }
  0x30   : > { %p1116_p12 = pnand %p1115_p11, %p1109_p5 }
  0x32   : > { %1119 = shalt.err (!%p1116_p12)
}
  0x33   : > { %s1673_s10 = smov 64   ;;  %s1675_s23 = smov 4  }
  0x34   : > { %1017 = dma.hbm_to_vmem [thread:$0]  (!%p1380_p6), %s1393_s27, 256, %s1395_s29, %s1397_s30, %s1673_s10, %s1673_s10, %s1675_s23  }
  0x35   : > { %s1672_s25 = sadd.s32 4294967295, %s1272_s16   ;;  %p125_p10 = scmp.ne.s32.totalorder %s1256_s12, %s1252_s11 }
  0x36   : > { %p1435_p13 = scmp.eq.s32.totalorder %s1672_s25, 0  ;;  %p915_p0 = scmp.ge.s32.totalorder %s1272_s16, 1 }
  0x37   : > { %p292_p1 = scmp.lt.s32.totalorder %s1272_s16, 5  ;;  %s1697_s0 = sld [smem:[#allocation17_spill]] }
  0x38   : > { %s1694_s26 = scalar_select %p1435_p13, 1, 0 }
  0x39   : > { %p1443_p2 = por %p1435_p13, %p125_p10  ;;  %p1447_p3 = pnand %p915_p0, %p292_p1 }
  0x3a   : > { %s1698_s1 = sld [smem:[#allocation18_spill]]  ;;  %s919_s23 = sshll.u32 %s1378_s19, 3 }
  0x3b   : > { %s1695_s22 = scalar_select %p1443_p2, 1, 0 }
  0x3c   : > { %s1696_s28 = scalar_select %p1447_p3, 1, 0 }
  0x3d   : > { %s305_s29 = sshll.u32 %s1697_s0, 4  ;;  %p1004_p4 = pneg %p1447_p3  ;;  %s306_s29 = int_to_ptr.vmem [resolvable:$true] %s305_s29 }
  0x3e   : > { %s951_s4 = sshll.u32 %s1268_s15, 7  ;;  %s1120_s2 = scalar_lea.vmem %s306_s29, 16 }
  0x3f   : > { %p1461_p5 = pnand %p1004_p4, %p1435_p13  ;;  %p1121_p7 = scmp.ne.s32.totalorder %s306_s29, %s1120_s2 }
  0x40   : > { %s316_s25 = sshll.u32 %s1698_s1, 4  ;;  %p1128_p10 = scmp.lt.s32.totalorder %s306_s29, %s306_s29  ;;  %s317_s25 = int_to_ptr.vmem [resolvable:$true] %s316_s25 }
  0x41   : > { %p1122_p9 = pneg %p1461_p5  ;;  %p1129_p0 = scmp.lt.s32.totalorder %s1120_s2, %s1120_s2 }
  0x43   : > { %p1123_p11 = pnand %p1122_p9, %p1121_p7  ;;  %p1130_p1 = por %p1129_p0, %p1128_p10 }
  0x45   : > { %p1124_p12 = pneg %p1123_p11 }
  0x47   : > { %p1131_p2 = pnand %p1130_p1, %p1124_p12 }
  0x49   : > { %1134 = shalt.err (!%p1131_p2)
}
  0x4a   : > { %s1277_s27 = smov [#allocation3]   ;;  %s1135_s11 = scalar_lea.vmem %s317_s25, 16 }
  0x4b   : > { %1007 = dma.vmem_to_smem (!%p1461_p5), %s306_s29, 16, %s1277_s27, [#allocation5]  }
  0x4c   : > { %p1136_p4 = scmp.ne.s32.totalorder %s317_s25, %s1135_s11  ;;  %p1143_p6 = scmp.lt.s32.totalorder %s317_s25, %s317_s25 }
  0x4d   : > { %p1144_p8 = scmp.lt.s32.totalorder %s1135_s11, %s1135_s11 }
  0x4e   : > { %p1138_p13 = pnand %p1136_p4, %p1122_p9 }
  0x4f   : > { %p1145_p7 = por %p1144_p8, %p1143_p6 }
  0x50   : > { %p1139_p3 = pneg %p1138_p13 }
  0x52   : > { %p1146_p11 = pnand %p1145_p7, %p1139_p3 }
  0x54   : > { %1149 = shalt.err (!%p1146_p11)
}
  0x55   : > { %s1278_s18 = smov [#allocation6]   ;;  %s1700_s3 = sld [smem:[#allocation19_spill]] }
  0x56   : > { %1010 = dma.vmem_to_smem (!%p1461_p5), %s317_s25, 16, %s1278_s18, [#allocation7]  }
  0x57   : > { %s334_s27 = scalar_lea.vmem [#allocation8], %s919_s23  ;;  %s987_s0 = smul.u32 48, %s1378_s19 }
  0x58   : > { %s343_s11 = sshll.u32 %s334_s27, 4  ;;  %s331_s1 = scalar_lea.sflag [#allocation4], %s1378_s19  ;;  %s1478_s11 = int_to_ptr.vmem [resolvable:$true] %s343_s11 }
  0x59   : > { %p1701_p8 = scmp.ne.s32.totalorder %s1693_s17, 0 }
  0x5b   : > { %s1476_s29 = scalar_lea.hbm %s1700_s3, %s951_s4  ;;  %s1155_s4 = scalar_lea.hbm %s1700_s3, 512 }
  0x5c   : > { %s1150_s10 = scalar_lea.hbm %s1476_s29, 128  ;;  %p1156_p3 = scmp.lt.u32.totalorder %s1476_s29, %s1700_s3 }
  0x5d   : > { %p1151_p6 = scmp.ne.s32.totalorder %s1476_s29, %s1150_s10  ;;  %p1157_p5 = scmp.lt.u32.totalorder %s1155_s4, %s1150_s10 }
  0x5e   : > { %p1159_p12 = scmp.lt.u32.totalorder %s1150_s10, %s1476_s29 }
  0x5f   : > { %p1153_p13 = pnand %p1151_p6, %p1701_p8  ;;  %p1158_p9 = por %p1157_p5, %p1156_p3 }
  0x61   : > { %p1154_p2 = pneg %p1153_p13  ;;  %p1160_p10 = por %p1159_p12, %p1158_p9 }
  0x63   : > { %p1161_p0 = pnand %p1160_p10, %p1154_p2 }
  0x65   : > { %1164 = shalt.err (!%p1161_p0)
}
  0x66   : > { %s1165_s23 = scalar_lea.vmem %s1478_s11, 128  ;;  %s1279_s27 = smov [#allocation8]  }
  0x67   : > { %p1166_p1 = scmp.ne.s32.totalorder %s1478_s11, %s1165_s23  ;;  %s1170_s25 = sshll.u32 %s1279_s27, 4  ;;  %s1171_s25 = int_to_ptr.vmem [resolvable:$false] %s1170_s25 }
  0x68   : > { %s1172_s18 = scalar_lea.vmem %s1171_s25, 256  ;;  %p1173_p11 = scmp.lt.s32.totalorder %s1478_s11, %s1171_s25 }
  0x69   : > { %p1168_p4 = pnand %p1166_p1, %p1701_p8  ;;  %p1174_p6 = scmp.lt.s32.totalorder %s1172_s18, %s1165_s23 }
  0x6b   : > { %p1169_p7 = pneg %p1168_p4  ;;  %p1175_p13 = por %p1174_p6, %p1173_p11 }
  0x6d   : > { %p1176_p3 = pnand %p1175_p13, %p1169_p7 }
  0x6f   : > { %1179 = shalt.err (!%p1176_p3)
}
  0x70   : > { %p1702_p2 = scmp.ne.s32.totalorder %s1691_s20, 0  ;;  %s1703_s10 = smov 4  }
  0x71   : > { %s1704_s4 = smov 64   ;;  %s988_s2 = smul.u32 768, %s1268_s15 }
  0x72   : > { %1014 = dma.hbm_to_vmem [thread:$0]  (!%p1702_p2), %s1476_s29, 128, %s1478_s11, %s331_s1, %s1704_s4, %s1704_s4, %s1703_s10  }
  0x73   : > { %s384_s24 = scalar_lea.vmem [#allocation11], %s987_s0  ;;  %s1514_s18 = scalar_lea.hbm %s1668_s6, %s988_s2 }
  0x74   : > { %s391_s23 = sshll.u32 %s384_s24, 4  ;;  %s1180_s3 = scalar_lea.hbm %s1514_s18, 768  ;;  %s1516_s23 = int_to_ptr.vmem [resolvable:$true] %s391_s23 }
  0x75   : > { %p1181_p5 = scmp.ne.s32.totalorder %s1514_s18, %s1180_s3  ;;  %s1185_s0 = scalar_lea.hbm %s1668_s6, 3072 }
  0x76   : > { %p1186_p10 = scmp.lt.u32.totalorder %s1514_s18, %s1668_s6  ;;  %p1187_p0 = scmp.lt.u32.totalorder %s1185_s0, %s1180_s3 }
  0x77   : > { %p1183_p9 = pnand %p1181_p5, %p1701_p8  ;;  %p1189_p4 = scmp.lt.u32.totalorder %s1180_s3, %s1514_s18 }
  0x78   : > { %p1188_p1 = por %p1187_p0, %p1186_p10 }
  0x79   : > { %p1184_p12 = pneg %p1183_p9 }
  0x7a   : > { %p1190_p7 = por %p1189_p4, %p1188_p1 }
  0x7c   : > { %p1191_p11 = pnand %p1190_p7, %p1184_p12 }
  0x7e   : > { %1194 = shalt.err (!%p1191_p11)
}
  0x7f   : > { %s1195_s2 = scalar_lea.vmem %s1516_s23, 768  ;;  %s1280_s24 = smov [#allocation11]  }
  0x80   : > { %p1196_p6 = scmp.ne.s32.totalorder %s1516_s23, %s1195_s2  ;;  %s1200_s27 = sshll.u32 %s1280_s24, 4  ;;  %s1201_s27 = int_to_ptr.vmem [resolvable:$false] %s1200_s27 }
  0x81   : > { %s1202_s25 = scalar_lea.vmem %s1201_s27, 1536  ;;  %p1203_p5 = scmp.lt.s32.totalorder %s1516_s23, %s1201_s27 }
  0x82   : > { %p1198_p13 = pnand %p1196_p6, %p1701_p8  ;;  %p1204_p9 = scmp.lt.s32.totalorder %s1202_s25, %s1195_s2 }
  0x84   : > { %p1199_p3 = pneg %p1198_p13  ;;  %p1205_p10 = por %p1204_p9, %p1203_p5 }
  0x86   : > { %p1206_p0 = pnand %p1205_p10, %p1199_p3 }
  0x88   : > { %1209 = shalt.err (!%p1206_p0)
}
  0x89   : > { %1020 = dma.hbm_to_vmem [thread:$0]  (!%p1702_p2), %s1514_s18, 768, %s1516_s23, %s1397_s30, %s1704_s4, %s1704_s4, %s1703_s10  }
  0x8a   : > { %p1705_p8 = scmp.ne.s32.totalorder %s1696_s28, 0 }
  0x8b   : > { %p1706_p12 = scmp.ne.s32.totalorder (!%p1705_p8), %s1694_s26, 0 }
  0x8c   : > { %415 = sbr.rel (%p1705_p8) target bundleno = 782 (0x30e), region = 56 }
  0x93   : > { %1235 = dma.done.wait (%p1706_p12), [#allocation5], 16  }
  0x94   : > { %1237 = vsyncadd (%p1706_p12), [#allocation5], 4294967280 }
  0x95   : > { %1239 = dma.done.wait (%p1706_p12), [#allocation7], 16  }
  0x96   : > { %1241 = vsyncadd (%p1706_p12), [#allocation7], 4294967280  ;;  %s425_s3 = sand.u32 1, %s1256_s12   ;;  %p1707_p2 = scmp.ne.s32.totalorder %s1695_s22, 0 }
  0x97   : > { %s929_s20 = sshll.u32 %s425_s3, 3  ;;  %s426_s30 = scalar_lea.sflag [#allocation4], %s425_s3 }
  0x98   : > { %s1554_s17 = scalar_lea.vmem [#allocation8], %s929_s20 }
  0x99   : > { %1243 = dma.done.wait (%p1707_p2), %s426_s30, 128  }
  0x9a   : > { %1245 = vsyncadd (%p1707_p2), %s426_s30, 4294967168  ;;  %s1708_s28 = sadd.s32 4294967295, %s1272_s16   ;;  %s930_s4 = sshll.u32 %s425_s3, 4 }
  0x9b   : > { %s434_s10 = sand.u32 1, %s1708_s28   ;;  %s438_s26 = scalar_lea.vmem [#allocation9], %s930_s4 }
  0x9c   : > { %s435_s23 = scalar_lea.sflag [#allocation10], %s434_s10 }
  0x9d   : > { %1247 = dma.done.wait (%p1707_p2), %s435_s23, 1024  }
  0x9e   : > { %1249 = vsyncadd (%p1707_p2), %s435_s23, 4294966272  ;;  %s989_s18 = smul.u32 48, %s425_s3 }
  0xa0   : > { %s1566_s1 = scalar_lea.vmem [#allocation11], %s989_s18 }
  0xa1   : > { %452 = sfence }
  0xa2   : > { %p503_p1 = scmp.lt.s32.totalorder %s1264_s14, 3  ;;  %p931_p4 = scmp.ne.s32.totalorder %s1264_s14, 0 }
  0xa3   : > { %vm523_vm0 = vcmask (!%p931_p4), 7168   ;;  %v1281_v0 = vmov (!%p931_p4), 0.0  }
  0xa4   : > { %s1570_s19 = scalar_select %p503_p1, %s1264_s14, 3 }
  0xa5   : > { %522 = sbr.rel (%p931_p4) target bundleno = 172 (0xac), region = 80  ;;  %524 = vst.msk [vmem:[%s1671_s9] sm:$0xff] (!%p931_p4), %vm523_vm0, %v1281_v0  ;;  %525 = vst.msk [vmem:[%s1671_s9 + $0x8] sm:$0xff] (!%p931_p4), %vm523_vm0, %v1281_v0 }
  0xa6   : > { %s505_s11 = scalar_lea.vmem %s1667_s5, %s1570_s19  ;;  %s508_s22 = scalar_lea.vmem %s1669_s7, %s1570_s19 }
  0xa7   : > { %s511_s3 = scalar_lea.vmem %s1670_s8, %s1570_s19 }
  0xac PF: > { %v1081_v1 = vld [vmem:[%s438_s26] sm:$0xff]   ;;  %v1282_v2 = vmov 0.0   ;;  %v1082_v3 = vld [vmem:[%s438_s26 + $0x8] sm:$0xff]   ;;  %vm1283_vm1 = vmmov 0   ;;  %vm556_vm2 = vcmask 261120   ;;  %v1086_v7 = vld [vmem:[%s1566_s1 + $0x10] sm:$0xff]  }
  0xad   : > { %963 = vmatprep.subr.bf16.mxu0 %v1282_v2  ;;  %971 = vmatprep.subr.bf16.mxu1 %v1282_v2  ;;  %v1084_v4 = vld [vmem:[%s1566_s1] sm:$0xff]   ;;  %v1083_v5 = vld [vmem:[%s1554_s17] sm:$0xff]   ;;  %v1087_v8 = vld [vmem:[%s1566_s1 + $0x18] sm:$0xff]   ;;  %vm659_vm3 = vcmask 785408   ;;  %s719_s0 = sld [smem:[#allocation6 + %s1264_s14]]  ;;  %vm731_vm4 = vcmask 7168  }
  0xae   : > { %964 = vmatpush3.bf16.msra.mxu0 %v1081_v1  ;;  %967 = vmatprep.mubr.msk.bf16.mxu0 %vm1283_vm1, %v1282_v2  ;;  %v1085_v6 = vld [vmem:[%s1566_s1 + $0x8] sm:$0xff]   ;;  %v1088_v9 = vld [vmem:[%s1566_s1 + $0x20] sm:$0xff]   ;;  %s725_s29 = sld [smem:[#allocation3 + %s1264_s14]]  ;;  %p946_p7 = scmp.ne.s32.totalorder %s1264_s14, 3 }
  0xaf   : > { %965 = vmatprep.subr.bf16.mxu0 %v1282_v2  ;;  %983 = vmatprep.mubr.msk.bf16.mxu1 %vm1283_vm1, %v1282_v2  ;;  %v1089_v10 = vld [vmem:[%s1566_s1 + $0x28] sm:$0xff]   ;;  %v932_v11 = vld [vmem:[%s505_s11] ss:$0 sm:$0xff]  ;;  %s740_s20 = sld [smem:[#allocation2]] (!%p946_p7) }
  0xb0   : > { %972 = vmatpush3.bf16.msra.mxu1 %v1084_v4  ;;  %v937_v21 = vld [vmem:[%s508_s22] ss:$0 sm:$0xff]  ;;  %v724_v42 = vld [vmem:[%s1671_s9 + $0x8] sm:$0xff] }
  0xb1   : > { %973 = vmatprep.subr.bf16.mxu1 %v1282_v2  ;;  %v945_v26 = vld [vmem:[%s511_s3] ss:$0 sm:$0xff] }
  0xb2   : > { %966 = vmatpush3.bf16.msra.mxu0 %v1082_v3  ;;  %v723_v37 = vld [vmem:[%s1671_s9] sm:$0xff] }
  0xb3   : > { %v720_v33 = vstv %s719_s0 }
  0xb4   : > { %974 = vmatpush3.bf16.msra.mxu1 %v1085_v6  ;;  %v726_v34 = vstv %s725_s29 }
  0xb5   : > { %968 = vmatmul.mubr.msk.bf16.vlgmr.msra.gmra.mrb[0].mxu0 %vm556_vm2, %v1083_v5  ;;  %975 = vmatprep.subr.bf16.mxu1 %v1282_v2  ;;  %v741_v47 = vstv (!%p946_p7), %s740_s20 }
  0xb8   : > { %976 = vmatpush3.bf16.msra.mxu1 %v1086_v7 }
  0xb9   : > { %977 = vmatprep.subr.bf16.mxu1 %v1282_v2 }
  0xbc   : > { %978 = vmatpush3.bf16.msra.mxu1 %v1087_v8 }
  0xbd   : > { %979 = vmatprep.subr.bf16.mxu1 %v1282_v2 }
  0xc0   : > { %980 = vmatpush3.bf16.msra.mxu1 %v1088_v9 }
  0xc1   : > { %981 = vmatprep.subr.bf16.mxu1 %v1282_v2 }
  0xc4   : > { %982 = vmatpush3.bf16.msra.mxu1 %v1089_v10 }
 0x188   : > { %v594_v12 = vpop.f32.mrb[0].mxu0 }
 0x189   : > { %v595_v13 = vadd.f32 %v932_v11, %v594_v12  ;;  %v969_v14 = vpop.f32.mrb[1].mxu0 }
 0x18a   : > { %v597_v15 = vpop.f32.mrb[2].mxu0 }
 0x18b   : > { %v598_v16 = vadd.f32 %v932_v11, %v597_v15  ;;  %v970_v17 = vpop.f32.mrb[3].mxu0  ;;  %v601_v18 = vmax.f32 %v595_v13, 0.0 }
 0x18d   : > { %v602_v19 = vmax.f32 %v598_v16, 0.0 }
 0x18f   : > { %v603_v20 = vpack.c.bf16 %v602_v19, %v601_v18 }
 0x191   : > { %984 = vmatmul.mubr.msk.bf16.vlgmr.msra.gmra.mrb[0].mxu1 %vm659_vm3, %v603_v20 }
 0x264   : > { %v697_v22 = vpop.f32.mrb[0].mxu1 }
 0x265   : > { %v698_v23 = vadd.f32 %v937_v21, %v697_v22  ;;  %v985_v24 = vpop.f32.mrb[1].mxu1 }
 0x266   : > { %v700_v25 = vpop.f32.mrb[2].mxu1 }
 0x267   : > { %v704_v27 = vmax.f32 %v698_v23, 0.0  ;;  %v701_v28 = vadd.f32 %v937_v21, %v700_v25  ;;  %v986_v29 = vpop.f32.mrb[3].mxu1 }
 0x269   : > { %v705_v30 = vmax.f32 %v701_v28, 0.0  ;;  %v713_v31 = vmul.f32 %v945_v26, %v704_v27 }
 0x26b   : > { %715 = vadd.xlane.f32.xlu0 %v713_v31  ;;  %v714_v32 = vmul.f32 %v945_v26, %v705_v30 }
 0x26f   : > { %717 = vadd.xlane.f32.xlu0 %v714_v32 }
 0x2f8   : > { %v716_v35 = vpop.xlane.xlu0 %715 }
 0x2f9   : > { %v721_v36 = vadd.f32 %v720_v33, %v716_v35 }
 0x2fb   : > { %v727_v38 = vmul.f32 %v726_v34, %v721_v36 }
 0x2fc   : > { %v718_v39 = vpop.xlane.xlu0 %717 }
 0x2fd   : > { %v729_v40 = vadd.f32 %v727_v38, %v723_v37  ;;  %v722_v41 = vadd.f32 %v720_v33, %v718_v39  ;;  %737 = sbr.rel (%p946_p7) target bundleno = 782 (0x30e), region = 84 }
 0x2ff   : > { %732 = vst.msk [vmem:[%s1671_s9] sm:$0xff] %vm731_vm4, %v729_v40  ;;  %v728_v43 = vmul.f32 %v726_v34, %v722_v41 }
 0x301   : > { %v730_v44 = vadd.f32 %v728_v43, %v724_v42 }
 0x303   : > { %733 = vst.msk [vmem:[%s1671_s9 + $0x8] sm:$0xff] %vm731_vm4, %v730_v44 }
 0x306   : > { %v738_v45 = vld [vmem:[%s1671_s9] sm:$0xff] }
 0x307   : > { %v742_v48 = vadd.f32 %v741_v47, %v738_v45 }
 0x309   : > { %744 = vst.msk [vmem:[%s1671_s9] sm:$0xff] %vm731_vm4, %v742_v48 }
 0x30a   : > { %v739_v46 = vld [vmem:[%s1671_s9 + $0x8] sm:$0xff] }
 0x30b   : > { %v743_v49 = vadd.f32 %v741_v47, %v739_v46 }
 0x30d   : > { %745 = vst.msk [vmem:[%s1671_s9 + $0x8] sm:$0xff] %vm731_vm4, %v743_v49 }
 0x30e PF: > { %s28_s16 = sadd.s32 1, %s1272_s16   ;;  %s1709_s18 = sld [smem:[#allocation16_spill]] }
 0x30f   : > { %p25_p11 = scmp.ge.s32.totalorder %s28_s16, 6   ;;  %s1710_s11 = smov %s1256_s12 }
 0x310   : > { %s1711_s12 = smov %s1260_s13  ;;  %s1712_s13 = smov %s1385_s21 }
 0x311   : > { %s1713_s14 = smov %s1268_s15  ;;  %27 = sbr.rel (!%p25_p11) target bundleno = 14 (0xe), region = 146 }
 0x314   : > { %s1714_s15 = smov %s1709_s18 }
 0x318   :  { %768 = vsyncpa [#allocation4], 1 }
 0x319   :  { %770 = vsyncpa [#allocation4 + $0x1], 1 }
 0x31a   :  { %771 = vsyncpa [#allocation10], 1 }
 0x31b   :  { %773 = vsyncpa [#allocation10 + $0x1], 1 }
 0x31c   :  { %774 = vsyncpa [#allocation5], 1 }
 0x31d   :  { %776 = vsyncpa [#allocation5 + $0x1], 1 }
 0x31e   :  { %777 = vsyncpa [#allocation7], 1 }

</bundles_post_ra>
